<compile_context>
chip_gen: v7x
topology: tpu7x:2x2x1
jax: 0.10.0
libtpu: 0.0.40
codegen_flags: <defaults>
</compile_context>

<pallas_src>
import math

import jax
import jax.numpy as jnp
from jax.experimental import pallas as pl
from jax.experimental.pallas import tpu as pltpu


# ---------------------------------------------------------------------------
# Kernel: fused prediction head for one batch tile
# ---------------------------------------------------------------------------

def prediction_head_kernel(x_ref, w1_ref, b1_ref, w2_ref, b2_ref, out_ref):
    """Fused SimplePredictionHead forward.

    x_ref:   (bm, T, D)   input sequence tile (batch-first, like PyTorch)
    w1_ref:  (D, 2D)      first Linear weight, stored transposed (x @ W)
    b1_ref:  (1, 2D)
    w2_ref:  (2D, N)      second Linear weight, transposed; N = pred_len*output_features
    b2_ref:  (1, N)
    out_ref: (bm, N)      flat predictions (reshaped to (B, pred_len, F) in the wrapper)
    """
    bm, T, D = x_ref.shape

    # Temporal mean pooling: torch.mean(x, dim=1)
    gfeat = jnp.sum(x_ref[...], axis=1) * (1.0 / T)                      # (bm, D)

    # Linear(D, 2D) + ReLU   (MXU matmul, f32 accumulation)
    h = jnp.dot(gfeat, w1_ref[...], preferred_element_type=jnp.float32) + b1_ref[...]
    h = jnp.maximum(h, 0.0)

    # TODO(synk): nn.Dropout(0.1) is eval-mode identity here; add pltpu.prng_*
    # based masking if training-mode parity is ever required.

    # Linear(2D, pred_len*output_features)
    out = jnp.dot(h, w2_ref[...], preferred_element_type=jnp.float32) + b2_ref[...]
    out_ref[...] = out.astype(out_ref.dtype)


# ---------------------------------------------------------------------------
# Wrapper
# ---------------------------------------------------------------------------

def simple_prediction_head_forward(x, params, pred_len, output_features):
    """x: (B, T, D) float32 -> (B, pred_len, output_features) float32."""
    B, T, D = x.shape
    w1, b1, w2, b2 = params
    H2 = w1.shape[1]                      # 2*D
    N = w2.shape[1]                       # pred_len * output_features
    assert N == pred_len * output_features

    # Batch tiling: single tile for small B, otherwise 128-row tiles (multiple of 8).
    if B <= 128:
        block_b, Bp = B, B
    else:
        block_b = 128
        Bp = ((B + block_b - 1) // block_b) * block_b
    xp = x if Bp == B else jnp.pad(x, ((0, Bp - B), (0, 0), (0, 0)))
    grid = (Bp // block_b,)

    # VMEM budget: double-buffered x/out tiles + resident weights + slack.
    itemsize = 4
    tile_bytes = (block_b * T * D + block_b * N) * itemsize
    weight_bytes = (D * H2 + H2 + H2 * N + N) * itemsize
    vmem_limit = min(int(2 * tile_bytes + weight_bytes) + (4 << 20), 96 << 20)

    cost = pl.CostEstimate(
        flops=2 * Bp * D * H2 + 2 * Bp * H2 * N + Bp * T * D,
        transcendentals=0,
        bytes_accessed=(Bp * T * D + D * H2 + H2 + H2 * N + N + Bp * N) * itemsize,
    )

    out_flat = pl.pallas_call(
        prediction_head_kernel,
        out_shape=jax.ShapeDtypeStruct((Bp, N), jnp.float32),
        grid=grid,
        in_specs=[
            pl.BlockSpec((block_b, T, D), lambda i: (i, 0, 0)),   # x tile
            pl.BlockSpec((D, H2), lambda i: (0, 0)),              # w1 (resident)
            pl.BlockSpec((1, H2), lambda i: (0, 0)),              # b1 (resident)
            pl.BlockSpec((H2, N), lambda i: (0, 0)),              # w2 (resident)
            pl.BlockSpec((1, N), lambda i: (0, 0)),               # b2 (resident)
        ],
        out_specs=pl.BlockSpec((block_b, N), lambda i: (i, 0)),
        compiler_params=pltpu.CompilerParams(
            dimension_semantics=("parallel",),
            vmem_limit_bytes=vmem_limit,
        ),
        cost_estimate=cost,
    )(xp, w1, b1, w2, b2)

    out_flat = out_flat[:B]
    return out_flat.reshape(B, pred_len, output_features)


# ---------------------------------------------------------------------------
# Deterministic parameter init (mirrors nn.Linear's uniform(-1/sqrt(fan_in), ...))
# ---------------------------------------------------------------------------

def init_params(key, input_size, pred_len, output_features):
    D = input_size
    H2 = 2 * D
    N = pred_len * output_features
    k1 = 1.0 / math.sqrt(D)
    k2 = 1.0 / math.sqrt(H2)
    key, a, b, c, d = jax.random.split(key, 5)
    w1 = jax.random.uniform(a, (D, H2), jnp.float32, -k1, k1)   # stored transposed
    b1 = jax.random.uniform(b, (1, H2), jnp.float32, -k1, k1)
    w2 = jax.random.uniform(c, (H2, N), jnp.float32, -k2, k2)   # stored transposed
    b2 = jax.random.uniform(d, (1, N), jnp.float32, -k2, k2)
    return (w1, b1, w2, b2)


def reference_forward(x, params, pred_len, output_features):
    """Pure-JAX reference for correctness checking."""
    w1, b1, w2, b2 = params
    g = jnp.mean(x, axis=1)
    h = jnp.maximum(g @ w1 + b1, 0.0)
    out = h @ w2 + b2
    return out.reshape(x.shape[0], pred_len, output_features)


# ---------------------------------------------------------------------------

if __name__ == "__main__":
    input_size = 32
    pred_len = 8
    output_features = 14
    B, T = 2, 8

    root = jax.random.PRNGKey(0)
    x_key, p_key = jax.random.split(root)
    x = jax.random.normal(x_key, (B, T, input_size), jnp.float32)
    params = init_params(p_key, input_size, pred_len, output_features)

    fwd = jax.jit(
        lambda xx, pp: simple_prediction_head_forward(xx, pp, pred_len, output_features)
    )
    out = jax.block_until_ready(fwd(x, params))

    assert out.shape == (B, pred_len, output_features), out.shape
    assert bool(jnp.all(jnp.isfinite(out)))

    ref = reference_forward(x, params, pred_len, output_features)
    assert bool(jnp.allclose(out, ref, atol=1e-5, rtol=1e-5))

    print("KERNEL_OK")
</pallas_src>

<mosaic_0001>
module attributes {stable_mosaic.version = 11 : i64} {
  func.func @prediction_head_kernel(%arg0: i32, %arg1: memref<2x8x32xf32, #tpu.memory_space<vmem>>, %arg2: memref<32x64xf32, #tpu.memory_space<vmem>>, %arg3: memref<1x64xf32, #tpu.memory_space<vmem>>, %arg4: memref<64x112xf32, #tpu.memory_space<vmem>>, %arg5: memref<1x112xf32, #tpu.memory_space<vmem>>, %arg6: memref<2x112xf32, #tpu.memory_space<vmem>>) attributes {dimension_semantics = [#tpu.dimension_semantics<parallel>], iteration_bounds = array<i64: 1>, scalar_prefetch = 0 : i64, scratch_operands = 0 : i64, tpu.core_type = #tpu.core_type<tc>, window_params = [{transform_indices = @transform_0, window_bounds = array<i64: 2, 8, 32>}, {pipeline_mode = #tpu.pipeline_mode<synchronous>, transform_indices = @transform_1, window_bounds = array<i64: 32, 64>}, {pipeline_mode = #tpu.pipeline_mode<synchronous>, transform_indices = @transform_2, window_bounds = array<i64: 1, 64>}, {pipeline_mode = #tpu.pipeline_mode<synchronous>, transform_indices = @transform_3, window_bounds = array<i64: 64, 112>}, {pipeline_mode = #tpu.pipeline_mode<synchronous>, transform_indices = @transform_4, window_bounds = array<i64: 1, 112>}, {transform_indices = @transform_5, window_bounds = array<i64: 2, 112>}]} {
    %c0 = arith.constant 0 : index
    %c0_0 = arith.constant 0 : index
    %c0_1 = arith.constant 0 : index
    %0 = vector.load %arg1[%c0, %c0_0, %c0_1] : memref<2x8x32xf32, #tpu.memory_space<vmem>>, vector<2x8x32xf32>
    %cst = arith.constant dense<0.000000e+00> : vector<2x32xf32>
    %1 = vector.multi_reduction <add>, %0, %cst [1] : vector<2x8x32xf32> to vector<2x32xf32>
    %cst_2 = arith.constant 1.250000e-01 : f32
    %2 = vector.broadcast %cst_2 : f32 to vector<2x32xf32>
    %3 = arith.mulf %1, %2 : vector<2x32xf32>
    %c0_3 = arith.constant 0 : index
    %c0_4 = arith.constant 0 : index
    %4 = vector.load %arg2[%c0_3, %c0_4] : memref<32x64xf32, #tpu.memory_space<vmem>>, vector<32x64xf32>
    %cst_5 = arith.constant dense<0.000000e+00> : vector<2x64xf32>
    %5 = tpu.matmul %3, %4, %cst_5 {dimension_numbers = #tpu.dot_dimension_numbers<[1], [0], [0], [1], [0, 0, 1, 1], [], []>} : vector<2x32xf32>, vector<32x64xf32>, vector<2x64xf32> -> vector<2x64xf32>
    %c0_6 = arith.constant 0 : index
    %c0_7 = arith.constant 0 : index
    %6 = vector.load %arg3[%c0_6, %c0_7] : memref<1x64xf32, #tpu.memory_space<vmem>>, vector<1x64xf32>
    %7 = vector.broadcast %6 : vector<1x64xf32> to vector<2x64xf32>
    %8 = arith.addf %5, %7 : vector<2x64xf32>
    %cst_8 = arith.constant 0.000000e+00 : f32
    %9 = vector.broadcast %cst_8 : f32 to vector<2x64xf32>
    %10 = arith.maximumf %8, %9 : vector<2x64xf32>
    %c0_9 = arith.constant 0 : index
    %c0_10 = arith.constant 0 : index
    %11 = vector.load %arg4[%c0_9, %c0_10] : memref<64x112xf32, #tpu.memory_space<vmem>>, vector<64x112xf32>
    %cst_11 = arith.constant dense<0.000000e+00> : vector<2x112xf32>
    %12 = tpu.matmul %10, %11, %cst_11 {dimension_numbers = #tpu.dot_dimension_numbers<[1], [0], [0], [1], [0, 0, 1, 1], [], []>} : vector<2x64xf32>, vector<64x112xf32>, vector<2x112xf32> -> vector<2x112xf32>
    %c0_12 = arith.constant 0 : index
    %c0_13 = arith.constant 0 : index
    %13 = vector.load %arg5[%c0_12, %c0_13] : memref<1x112xf32, #tpu.memory_space<vmem>>, vector<1x112xf32>
    %14 = vector.broadcast %13 : vector<1x112xf32> to vector<2x112xf32>
    %15 = arith.addf %12, %14 : vector<2x112xf32>
    %c0_14 = arith.constant 0 : index
    %c0_15 = arith.constant 0 : index
    %16 = vector.load %arg6[%c0_14, %c0_15] : memref<2x112xf32, #tpu.memory_space<vmem>>, vector<2x112xf32>
    tpu.vector_store %arg6[%c0_14, %c0_15], %15 {strides = array<i32>} : memref<2x112xf32, #tpu.memory_space<vmem>>, vector<2x112xf32>,
    return
  }
  func.func @transform_0(%arg0: i32) -> (i32, i32, i32) {
    %c0_i32 = arith.constant 0 : i32
    %c0_i32_0 = arith.constant 0 : i32
    %c0_i32_1 = arith.constant 0 : i32
    return %arg0, %c0_i32, %c0_i32_0 : i32, i32, i32
  }
  func.func @transform_1(%arg0: i32) -> (i32, i32) {
    %c0_i32 = arith.constant 0 : i32
    %c0_i32_0 = arith.constant 0 : i32
    %c0_i32_1 = arith.constant 0 : i32
    return %c0_i32, %c0_i32_0 : i32, i32
  }
  func.func @transform_2(%arg0: i32) -> (i32, i32) {
    %c0_i32 = arith.constant 0 : i32
    %c0_i32_0 = arith.constant 0 : i32
    %c0_i32_1 = arith.constant 0 : i32
    return %c0_i32, %c0_i32_0 : i32, i32
  }
  func.func @transform_3(%arg0: i32) -> (i32, i32) {
    %c0_i32 = arith.constant 0 : i32
    %c0_i32_0 = arith.constant 0 : i32
    %c0_i32_1 = arith.constant 0 : i32
    return %c0_i32, %c0_i32_0 : i32, i32
  }
  func.func @transform_4(%arg0: i32) -> (i32, i32) {
    %c0_i32 = arith.constant 0 : i32
    %c0_i32_0 = arith.constant 0 : i32
    %c0_i32_1 = arith.constant 0 : i32
    return %c0_i32, %c0_i32_0 : i32, i32
  }
  func.func @transform_5(%arg0: i32) -> (i32, i32) {
    %c0_i32 = arith.constant 0 : i32
    %c0_i32_0 = arith.constant 0 : i32
    return %arg0, %c0_i32 : i32, i32
  }
}

</mosaic_0001>

<bundles_post_ra>
// kernel: _lambda_.1
= control target key start
LH: loop header
LB: loop body
LE: loop exit
PB: predicated region body
PF: predicated region fallthrough
CT: control target
= control target key end

     0   :  { %10 = vsyncpa [#allocation3], 0  ;;  %s511_s0 = inlined_call_operand.hbm [shape: f32[2,8,32], index: 0, kind: input, shape index: {}]   ;;  %s512_s1 = inlined_call_operand.hbm [shape: f32[32,64], index: 1, kind: input, shape index: {}]   ;;  %s513_s2 = inlined_call_operand.vmem [shape: f32[1,64], index: 2, kind: input, shape index: {}]   ;;  %s514_s3 = inlined_call_operand.hbm [shape: f32[64,112], index: 3, kind: input, shape index: {}]   ;;  %s515_s4 = inlined_call_operand.vmem [shape: f32[1,112], index: 4, kind: input, shape index: {}]   ;;  %s516_s5 = inlined_call_operand.vmem [shape: f32[2,112], index: 5, kind: output, shape index: {}]  }
   0x1   :  { %11 = vsyncpa [#allocation5], 0  ;;  %s409_s18 = smov [#allocation4]   ;;  %s410_s20 = smov [#allocation2]  }
   0x2   :  { %s29_s19 = sshll.u32 %s409_s18, 4  ;;  %s17_s21 = sshll.u32 %s410_s20, 4  ;;  %s30_s19 = int_to_ptr.vmem [resolvable:$true] %s29_s19  ;;  %s447_s21 = int_to_ptr.vmem [resolvable:$true] %s17_s21 }
   0x3   :  { %s339_s24 = scalar_lea.hbm %s512_s1, 512 }
   0x4   :  { %p340_p0 = scmp.ne.s32.totalorder %s512_s1, %s339_s24  ;;  %p343_p1 = scmp.lt.u32.totalorder %s339_s24, %s512_s1 }
   0x6   :  { %p345_p2 = pnand %p343_p1, %p340_p0 }
   0x8   :  { %348 = shalt.err (!%p345_p2)
}
   0x9   :  { %s349_s29 = scalar_lea.vmem %s30_s19, 512  ;;  %p354_p4 = scmp.lt.s32.totalorder %s30_s19, %s30_s19 }
   0xa   :  { %p350_p3 = scmp.ne.s32.totalorder %s30_s19, %s349_s29  ;;  %p355_p5 = scmp.lt.s32.totalorder %s349_s29, %s349_s29 }
   0xc   :  { %p356_p6 = por %p355_p5, %p354_p4 }
   0xe   :  { %p357_p7 = pnand %p356_p6, %p350_p3 }
  0x10   :  { %360 = shalt.err (!%p357_p7)
}
  0x11   :  { %s411_s30 = smov 128   ;;  %s412_s6 = smov 8  }
  0x12   :  { %35 = dma.hbm_to_vmem [thread:$0]  %s512_s1, 512, %s30_s19, [#allocation5], %s411_s30, %s411_s30, %s412_s6  }
  0x13   :  { %s361_s11 = scalar_lea.hbm %s511_s0, 256 }
  0x14   :  { %p362_p8 = scmp.ne.s32.totalorder %s511_s0, %s361_s11  ;;  %p365_p9 = scmp.lt.u32.totalorder %s361_s11, %s511_s0 }
  0x16   :  { %p367_p10 = pnand %p365_p9, %p362_p8 }
  0x18   :  { %370 = shalt.err (!%p367_p10)
}
  0x19   :  { %s371_s16 = scalar_lea.vmem %s447_s21, 256  ;;  %p376_p12 = scmp.lt.s32.totalorder %s447_s21, %s447_s21 }
  0x1a   :  { %p372_p11 = scmp.ne.s32.totalorder %s447_s21, %s371_s16  ;;  %p377_p13 = scmp.lt.s32.totalorder %s371_s16, %s371_s16 }
  0x1c   :  { %p378_p0 = por %p377_p13, %p376_p12 }
  0x1e   :  { %p379_p1 = pnand %p378_p0, %p372_p11 }
  0x20   :  { %382 = shalt.err (!%p379_p1)
}
  0x21   :  { %23 = dma.hbm_to_vmem [thread:$0]  %s511_s0, 256, %s447_s21, [#allocation3], %s411_s30, %s411_s30, %s412_s6  }
  0x22   :  { %s413_s18 = smov [#allocation6]   ;;  %s383_s23 = scalar_lea.hbm %s514_s3, 1024 }
  0x23   :  { %s43_s19 = sshll.u32 %s413_s18, 4  ;;  %p384_p2 = scmp.ne.s32.totalorder %s514_s3, %s383_s23  ;;  %s44_s19 = int_to_ptr.vmem [resolvable:$true] %s43_s19 }
  0x24   :  { %p387_p3 = scmp.lt.u32.totalorder %s383_s23, %s514_s3 }
  0x26   :  { %p389_p4 = pnand %p387_p3, %p384_p2 }
  0x28   :  { %392 = shalt.err (!%p389_p4)
}
  0x29   :  { %s393_s28 = scalar_lea.vmem %s44_s19, 1024  ;;  %p398_p6 = scmp.lt.s32.totalorder %s44_s19, %s44_s19 }
  0x2a   :  { %p394_p5 = scmp.ne.s32.totalorder %s44_s19, %s393_s28  ;;  %p399_p7 = scmp.lt.s32.totalorder %s393_s28, %s393_s28 }
  0x2c   :  { %p400_p8 = por %p399_p7, %p398_p6 }
  0x2e   :  { %p401_p9 = pnand %p400_p8, %p394_p5 }
  0x30   :  { %404 = shalt.err (!%p401_p9)
}
  0x31   :  { %49 = dma.hbm_to_vmem [thread:$0]  %s514_s3, 1024, %s44_s19, [#allocation5], %s411_s30, %s411_s30, %s412_s6  }
  0x32   :  { %405 = dma.done.wait [#allocation3], 256  }
  0x33   :  { %406 = vsyncadd [#allocation3], 4294967040 }
  0x34   :  { %407 = dma.done.wait [#allocation5], 1536  }
  0x35   :  { %408 = vsyncadd [#allocation5], 4294965760  ;;  %v414_v0 = vmov 0.0|0.0   ;;  %vm415_vm0 = vmmov 0   ;;  %v416_v1 = vmov 0.0   ;;  %vm63_vm1 = vcmask 261120  }
  0x36   :  { %313 = vmatprep.subr.bf16.mxu0 %v414_v0  ;;  %291 = vmatprep.mubr.msk.f32.mxu0 %vm415_vm0, %v416_v1  ;;  %v80_v2 = vld [vmem:[#allocation4] sm:$0xff]  ;;  %v81_v3 = vld [vmem:[#allocation4 + $0x8] sm:$0xff]  ;;  %v82_v4 = vld [vmem:[#allocation4 + $0x10] sm:$0xff]  ;;  %vm93_vm2 = vcmask 1041409   ;;  %vm183_vm3 = vcmask 523264   ;;  %vm257_vm4 = vcmask 910336  }
  0x37   :  { %319 = vmatprep.subr.bf16.mxu1 %v414_v0  ;;  %310 = vmatprep.mubr.msk.f32.mxu1 %vm415_vm0, %v416_v1  ;;  %v314_v5 = vpack.c.bf16 %v81_v3, %v80_v2  ;;  %v83_v6 = vld [vmem:[#allocation4 + $0x18] sm:$0xff]  ;;  %v61_v7 = vld [vmem:[#allocation2] sm:$0xff]  ;;  %v168_v11 = vld [vmem:[#allocation6] sm:$0xff] }
  0x38   :  { %v62_v8 = vld [vmem:[#allocation2 + $0x8] sm:$0xff]  ;;  %v64_v9 = vsel %vm63_vm1, %v61_v7, 0.0  ;;  %v169_v12 = vld [vmem:[#allocation6 + $0x8] sm:$0xff]  ;;  %v170_v13 = vld [vmem:[#allocation6 + $0x10] sm:$0xff]  ;;  %v317_v14 = vpack.c.bf16 %v83_v6, %v82_v4 }
  0x39   :  { %v71_v10 = vsel %vm63_vm1, %v62_v8, 0.0  ;;  %315 = vmatpush3.bf16.msra.mxu0 %v314_v5  ;;  %v65_v15 = vrot.slane %v64_v9, 4  ;;  %v320_v17 = vpack.c.bf16 %v169_v12, %v168_v11  ;;  %v171_v18 = vld [vmem:[#allocation6 + $0x18] sm:$0xff]  ;;  %v172_v22 = vld [vmem:[#allocation6 + $0x20] sm:$0xff]  ;;  %v173_v23 = vld [vmem:[#allocation6 + $0x28] sm:$0xff] }
  0x3a   :  { %v72_v16 = vrot.slane %v71_v10, 4  ;;  %316 = vmatprep.subr.bf16.mxu0 %v414_v0  ;;  %v323_v21 = vpack.c.bf16 %v171_v18, %v170_v13  ;;  %v326_v28 = vpack.c.bf16 %v173_v23, %v172_v22  ;;  %v174_v36 = vld [vmem:[#allocation6 + $0x30] sm:$0xff]  ;;  %v175_v37 = vld [vmem:[#allocation6 + $0x38] sm:$0xff] }
  0x3b   :  { %v66_v19 = vadd.f32 %v65_v15, %v64_v9  ;;  %321 = vmatpush3.bf16.msra.mxu1 %v320_v17  ;;  %v329_v38 = vpack.c.bf16 %v175_v37, %v174_v36  ;;  %v265_v39 = vld [vmem:[%s513_s2] ss:$0 sm:$0xff] }
  0x3c   :  { %v73_v20 = vadd.f32 %v72_v16, %v71_v10  ;;  %322 = vmatprep.subr.bf16.mxu1 %v414_v0  ;;  %v267_v44 = vld [vmem:[%s515_s4] ss:$0 sm:$0xff] }
  0x3d   :  { %318 = vmatpush3.bf16.msra.mxu0 %v317_v14  ;;  %v67_v24 = vrot.slane %v66_v19, 2 }
  0x3e   :  { %v74_v25 = vrot.slane %v73_v20, 2 }
  0x3f   :  { %v68_v26 = vadd.f32 %v67_v24, %v66_v19  ;;  %324 = vmatpush3.bf16.msra.mxu1 %v323_v21 }
  0x40   :  { %v75_v27 = vadd.f32 %v74_v25, %v73_v20  ;;  %325 = vmatprep.subr.bf16.mxu1 %v414_v0 }
  0x41   :  { %v69_v29 = vrot.slane %v68_v26, 1 }
  0x42   :  { %v76_v30 = vrot.slane %v75_v27, 1 }
  0x43   :  { %v70_v31 = vadd.f32 %v69_v29, %v68_v26  ;;  %327 = vmatpush3.bf16.msra.mxu1 %v326_v28 }
  0x44   :  { %v77_v32 = vadd.f32 %v76_v30, %v75_v27  ;;  %328 = vmatprep.subr.bf16.mxu1 %v414_v0 }
  0x45   :  { %v78_v33 = vmul.f32 0.125, %v70_v31 }
  0x46   :  { %v79_v34 = vmul.f32 0.125, %v77_v32 }
  0x47   :  { %330 = vmatpush3.bf16.msra.mxu1 %v329_v38 }
  0x48   :  { %v94_v35 = vsel %vm93_vm2, %v79_v34, %v78_v33 }
  0x49   :  { %292 = vmatmul.mubr.msk.f32.vlgmr.msra.gmra.mrb[0].mxu0 %vm63_vm1, %v94_v35 }
 0x11c   :  { %v163_v40 = vpop.f32.mrb[0].mxu0 }
 0x11d   :  { %v164_v41 = vadd.f32 %v265_v39, %v163_v40  ;;  %v293_v42 = vpop.f32.mrb[1].mxu0 }
 0x11f   :  { %v167_v43 = vmax.f32 %v164_v41, 0.0 }
 0x121   :  { %311 = vmatmul.mubr.msk.f32.vlgmr.msra.gmra.mrb[0].mxu1 %vm183_vm3, %v167_v43 }
 0x1f4   :  { %v253_v45 = vpop.f32.mrb[0].mxu1 }
 0x1f5   :  { %v254_v46 = vadd.f32 %v267_v44, %v253_v45  ;;  %v312_v47 = vpop.f32.mrb[1].mxu1 }
 0x1f7   :  { %258 = vst.msk [vmem:[%s516_s5] sm:$0x3] %vm257_vm4, %v254_v46 }
 0x1f8   :  { %263 = vsyncpa [#allocation3], 1 }
 0x1f9   :  { %264 = vsyncpa [#allocation5], 1 }

</bundles_post_ra>
